<compile_context>
chip_gen: v5e
topology: v5e:2x2
jax: 0.10.0
libtpu: 0.0.40
codegen_flags: <defaults>
</compile_context>

<pallas_src>
import numpy as np

import jax
import jax.numpy as jnp
from jax.experimental import pallas as pl
from jax.experimental.pallas import tpu as pltpu


def _make_slot_kernel(H, W):
    """Kernel closure over the static spatial dims."""
    N = H * W
    inv_n = 1.0 / float(N)

    def kernel(x_ref, wbig_ref, bbig_ref, maxsel_ref, sumsel_ref, o_ref):
        # x_ref:      (TB*C, N)     TB images, channel rows stacked; N = H*W (lane-dense)
        # wbig_ref:   (TB*S, TB*C)  block-diagonal 1x1-conv weight (w on each diag block)
        # bbig_ref:   (TB*S, 1)     conv bias tiled per image
        # maxsel_ref: (N, N)        0/1: maxsel[n, m] = (n == (m // W) * W)   (pick segment
        #                           start -> broadcast, fused into one matmul)
        # sumsel_ref: (N, N)        0/1: sumsel[n, m] = (n // W == m // W)    (segment sum
        #                           -> broadcast, fused into one matmul)
        # o_ref:      (1, TB*S, 1)  pooled outputs for this batch tile
        x = x_ref[...].astype(jnp.float32)

        # ---- 1x1 conv for the whole batch tile: one MXU matmul.  Bias broadcast
        # happens once per grid step.
        y = jnp.dot(wbig_ref[...], x, preferred_element_type=jnp.float32) + bbig_ref[...]
        # y: (TB*S, N); row t*S + s is image t, slot s.

        # ---- softmax over W (PyTorch dim=-1): segments of W consecutive lanes.
        # Windowed max via log-step XLU rolls; lane h*W then holds the segment max,
        # which the fused (N, N) selector matmul picks out and broadcasts back in a
        # single MXU op.  Softmax is shift-invariant per segment, so this is exact.
        wm = y
        shift = 1
        while shift < W:
            wm = jnp.maximum(wm, pltpu.roll(wm, N - shift, axis=1))
            shift *= 2
        mx = jnp.dot(wm, maxsel_ref[...], preferred_element_type=jnp.float32)   # (TB*S, N)
        e = jnp.exp(y - mx)
        den = jnp.dot(e, sumsel_ref[...], preferred_element_type=jnp.float32)   # (TB*S, N)
        p = e / den                                                              # in (0, 1]

        # ---- softmax over H (PyTorch dim=-2): stride-W residue classes of the
        # N lanes.  p is in (0, 1], so no max-shift is needed for stability.  The
        # log2(H) cyclic roll+add steps leave every lane already holding its full
        # column sum (requires power-of-two H).
        eh = jnp.exp(p)
        cs = eh
        shift = W
        while shift < N:
            cs = cs + pltpu.roll(cs, N - shift, axis=1)
            shift *= 2
        p2 = eh / cs

        # ---- global average pool over (H, W): lane reduction over N.
        # (If the XLU ever binds at large TB, this can move to the MXU as a
        # (TB*S, N) @ (N, 1) ones-matmul with 1/N folded in.)
        pooled = jnp.sum(p2, axis=-1, keepdims=True) * inv_n                     # (TB*S, 1)
        o_ref[0] = pooled.astype(o_ref.dtype)

    return kernel


def _pick_batch_tile(batch, channels, n, itemsize, max_block_bytes=4 << 20, max_tb=64):
    """Largest divisor TB of `batch` such that the (TB*C, N) input block satisfies
    the TPU (8, 128) sublane-tiling rule and the per-step footprint (input block,
    TB^2-scaling block-diagonal weight, (TB*S, N) intermediates) stays comfortably
    inside even v7x's 32 MiB default scoped VMEM.

    No grid >= 2 constraint: on single-TC parts (v5e/v6e) extra grid steps are
    pure ~600-cycle overhead, and on v7x megacore sharding only pays once the
    per-step work is large."""
    best = None
    for d in range(1, batch + 1):
        if batch % d:
            continue
        aligned = (d * channels) % 8 == 0 or d == batch   # block == full dim is always OK
        fits = d * channels * n * itemsize <= max_block_bytes
        if aligned and fits and d <= max_tb:
            best = d
    if best is None:
        best = batch   # tiny/odd shapes: take the whole batch in one step
    return best


@jax.jit
def slot_generator(x, weight, bias):
    """x: (B, C, H, W) NCHW; weight: (S, C); bias: (S,). -> (B, S, 1, 1)."""
    B, C, H, W = x.shape
    S = weight.shape[0]
    N = H * W
    # The stride-W roll reduction for the H-softmax assumes power-of-two H.
    assert H & (H - 1) == 0, "H must be a power of two"
    assert weight.shape == (S, C) and bias.shape == (S,)

    TB = _pick_batch_tile(B, C, N, jnp.dtype(x.dtype).itemsize)
    G = B // TB

    # Free contiguous reshape of NCHW -- no transpose, no dtype upcast (bf16 inputs
    # stay bf16 over HBM and are cast to f32 inside the kernel).
    x2 = x.reshape(B * C, N)

    w = weight.astype(jnp.float32)                       # (S, C)
    b = bias.astype(jnp.float32)                         # (S,)
    # Block-diagonal weight: folds the whole batch-tile 1x1 conv into a single
    # (TB*S, TB*C) @ (TB*C, N) MXU matmul (the off-diagonal zeros are exact).
    w_big = jnp.kron(jnp.eye(TB, dtype=jnp.float32), w)  # (TB*S, TB*C)
    b_big = jnp.tile(b, TB).reshape(TB * S, 1)           # (TB*S, 1)

    # Fused pick+broadcast / sum+broadcast selector constants (baked under jit).
    # Kept in f32 to avoid mixed-dtype dots; at N=256 they are 2 x 256 KiB.
    n_idx = np.arange(N)
    seg = n_idx // W
    maxsel = jnp.asarray(n_idx[:, None] == seg[None, :] * W, dtype=jnp.float32)  # (N, N)
    sumsel = jnp.asarray(seg[:, None] == seg[None, :], dtype=jnp.float32)        # (N, N)

    kernel = _make_slot_kernel(H, W)
    out = pl.pallas_call(
        kernel,
        out_shape=jax.ShapeDtypeStruct((G, TB * S, 1), jnp.float32),
        grid_spec=pltpu.PrefetchScalarGridSpec(
            num_scalar_prefetch=0,
            grid=(G,),
            in_specs=[
                pl.BlockSpec((TB * C, N), lambda g: (g, 0)),
                pl.BlockSpec((TB * S, TB * C), lambda g: (0, 0)),
                pl.BlockSpec((TB * S, 1), lambda g: (0, 0)),
                pl.BlockSpec((N, N), lambda g: (0, 0)),
                pl.BlockSpec((N, N), lambda g: (0, 0)),
            ],
            out_specs=pl.BlockSpec((1, TB * S, 1), lambda g: (g, 0, 0)),
        ),
        compiler_params=pltpu.CompilerParams(dimension_semantics=("parallel",)),
    )(x2, w_big, b_big, maxsel, sumsel)

    # Only B*S pooled floats come back; this reshape is negligible.
    return out.reshape(B, S, 1, 1).astype(x.dtype)


def slot_generator_ref(x, weight, bias):
    """Plain-JAX reference of the forward pass (global avg pool interpretation)."""
    y = jnp.einsum("bchw,sc->bshw", x, weight) + bias[None, :, None, None]
    y = jax.nn.softmax(y, axis=-1)   # softmax over W
    y = jax.nn.softmax(y, axis=-2)   # softmax over H
    return jnp.mean(y, axis=(-2, -1), keepdims=True)  # (B, S, 1, 1)


if __name__ == "__main__":
    B, C, H, W = 2, 4, 16, 16   # batch, in_channels, spatial
    S = 8                        # slot_num

    key = jax.random.PRNGKey(0)
    kx, kw, kb = jax.random.split(key, 3)

    x = jax.random.normal(kx, (B, C, H, W), dtype=jnp.float32)

    # Parameter init mirroring nn.Conv2d defaults:
    # uniform(-1/sqrt(fan_in), 1/sqrt(fan_in)) with fan_in = C * 1 * 1.
    bound = 1.0 / np.sqrt(C)
    weight = jax.random.uniform(kw, (S, C), minval=-bound, maxval=bound,
                                dtype=jnp.float32)
    bias = jax.random.uniform(kb, (S,), minval=-bound, maxval=bound,
                              dtype=jnp.float32)

    out = jax.block_until_ready(slot_generator(x, weight, bias))
    ref = slot_generator_ref(x, weight, bias)

    assert out.shape == (B, S, 1, 1), out.shape
    # Exact divides (no approx reciprocal) -> tight tolerance.
    assert jnp.allclose(out, ref, atol=1e-4, rtol=1e-4), (
        f"max abs diff {jnp.max(jnp.abs(out - ref))}")

    print("KERNEL_OK")
</pallas_src>

<mosaic_0001>
module attributes {stable_mosaic.version = 11 : i64} {
  func.func @kernel(%arg0: i32, %arg1: memref<8x256xf32, #tpu.memory_space<vmem>>, %arg2: memref<16x8xf32, #tpu.memory_space<vmem>>, %arg3: memref<16x1xf32, #tpu.memory_space<vmem>>, %arg4: memref<256x256xf32, #tpu.memory_space<vmem>>, %arg5: memref<256x256xf32, #tpu.memory_space<vmem>>, %arg6: memref<1x16x1xf32, #tpu.memory_space<vmem>>) attributes {dimension_semantics = [#tpu.dimension_semantics<parallel>], iteration_bounds = array<i64: 1>, scalar_prefetch = 0 : i64, scratch_operands = 0 : i64, tpu.core_type = #tpu.core_type<tc>, window_params = [{transform_indices = @transform_0, window_bounds = array<i64: 8, 256>}, {pipeline_mode = #tpu.pipeline_mode<synchronous>, transform_indices = @transform_1, window_bounds = array<i64: 16, 8>}, {pipeline_mode = #tpu.pipeline_mode<synchronous>, transform_indices = @transform_2, window_bounds = array<i64: 16, 1>}, {pipeline_mode = #tpu.pipeline_mode<synchronous>, transform_indices = @transform_3, window_bounds = array<i64: 256, 256>}, {pipeline_mode = #tpu.pipeline_mode<synchronous>, transform_indices = @transform_4, window_bounds = array<i64: 256, 256>}, {transform_indices = @transform_5, window_bounds = array<i64: 1, 16, 1>}]} {
    %c0 = arith.constant 0 : index
    %c0_0 = arith.constant 0 : index
    %0 = vector.load %arg1[%c0, %c0_0] : memref<8x256xf32, #tpu.memory_space<vmem>>, vector<8x256xf32>
    %c0_1 = arith.constant 0 : index
    %c0_2 = arith.constant 0 : index
    %1 = vector.load %arg2[%c0_1, %c0_2] : memref<16x8xf32, #tpu.memory_space<vmem>>, vector<16x8xf32>
    %cst = arith.constant dense<0.000000e+00> : vector<16x256xf32>
    %2 = tpu.matmul %1, %0, %cst {dimension_numbers = #tpu.dot_dimension_numbers<[1], [0], [0], [1], [0, 0, 1, 1], [], []>} : vector<16x8xf32>, vector<8x256xf32>, vector<16x256xf32> -> vector<16x256xf32>
    %c0_3 = arith.constant 0 : index
    %c0_4 = arith.constant 0 : index
    %3 = vector.load %arg3[%c0_3, %c0_4] : memref<16x1xf32, #tpu.memory_space<vmem>>, vector<16x1xf32>
    %4 = vector.broadcast %3 : vector<16x1xf32> to vector<16x256xf32>
    %5 = arith.addf %2, %4 : vector<16x256xf32>
    %c255_i32 = arith.constant 255 : i32
    %6 = tpu.dynamic_rotate %5 by %c255_i32 dim 1 : vector<16x256xf32>, i32 -> vector<16x256xf32>
    %7 = arith.maximumf %5, %6 : vector<16x256xf32>
    %c254_i32 = arith.constant 254 : i32
    %8 = tpu.dynamic_rotate %7 by %c254_i32 dim 1 : vector<16x256xf32>, i32 -> vector<16x256xf32>
    %9 = arith.maximumf %7, %8 : vector<16x256xf32>
    %c252_i32 = arith.constant 252 : i32
    %10 = tpu.dynamic_rotate %9 by %c252_i32 dim 1 : vector<16x256xf32>, i32 -> vector<16x256xf32>
    %11 = arith.maximumf %9, %10 : vector<16x256xf32>
    %c248_i32 = arith.constant 248 : i32
    %12 = tpu.dynamic_rotate %11 by %c248_i32 dim 1 : vector<16x256xf32>, i32 -> vector<16x256xf32>
    %13 = arith.maximumf %11, %12 : vector<16x256xf32>
    %c0_5 = arith.constant 0 : index
    %c0_6 = arith.constant 0 : index
    %14 = vector.load %arg4[%c0_5, %c0_6] : memref<256x256xf32, #tpu.memory_space<vmem>>, vector<256x256xf32>
    %cst_7 = arith.constant dense<0.000000e+00> : vector<16x256xf32>
    %15 = tpu.matmul %13, %14, %cst_7 {dimension_numbers = #tpu.dot_dimension_numbers<[1], [0], [0], [1], [0, 0, 1, 1], [], []>} : vector<16x256xf32>, vector<256x256xf32>, vector<16x256xf32> -> vector<16x256xf32>
    %16 = arith.subf %5, %15 : vector<16x256xf32>
    %17 = math.exp %16 : vector<16x256xf32>
    %c0_8 = arith.constant 0 : index
    %c0_9 = arith.constant 0 : index
    %18 = vector.load %arg5[%c0_8, %c0_9] : memref<256x256xf32, #tpu.memory_space<vmem>>, vector<256x256xf32>
    %cst_10 = arith.constant dense<0.000000e+00> : vector<16x256xf32>
    %19 = tpu.matmul %17, %18, %cst_10 {dimension_numbers = #tpu.dot_dimension_numbers<[1], [0], [0], [1], [0, 0, 1, 1], [], []>} : vector<16x256xf32>, vector<256x256xf32>, vector<16x256xf32> -> vector<16x256xf32>
    %20 = arith.divf %17, %19 : vector<16x256xf32>
    %21 = math.exp %20 : vector<16x256xf32>
    %c240_i32 = arith.constant 240 : i32
    %22 = tpu.dynamic_rotate %21 by %c240_i32 dim 1 : vector<16x256xf32>, i32 -> vector<16x256xf32>
    %23 = arith.addf %21, %22 : vector<16x256xf32>
    %c224_i32 = arith.constant 224 : i32
    %24 = tpu.dynamic_rotate %23 by %c224_i32 dim 1 : vector<16x256xf32>, i32 -> vector<16x256xf32>
    %25 = arith.addf %23, %24 : vector<16x256xf32>
    %c192_i32 = arith.constant 192 : i32
    %26 = tpu.dynamic_rotate %25 by %c192_i32 dim 1 : vector<16x256xf32>, i32 -> vector<16x256xf32>
    %27 = arith.addf %25, %26 : vector<16x256xf32>
    %c128_i32 = arith.constant 128 : i32
    %28 = tpu.dynamic_rotate %27 by %c128_i32 dim 1 : vector<16x256xf32>, i32 -> vector<16x256xf32>
    %29 = arith.addf %27, %28 : vector<16x256xf32>
    %30 = arith.divf %21, %29 : vector<16x256xf32>
    %cst_11 = arith.constant dense<0.000000e+00> : vector<16xf32>
    %31 = vector.multi_reduction <add>, %30, %cst_11 [1] : vector<16x256xf32> to vector<16xf32>
    %32 = vector.shape_cast %31 : vector<16xf32> to vector<16x1xf32>
    %cst_12 = arith.constant 3.906250e-03 : f32
    %33 = vector.broadcast %cst_12 : f32 to vector<16x1xf32>
    %34 = arith.mulf %32, %33 : vector<16x1xf32>
    %c0_13 = arith.constant 0 : index
    %c0_14 = arith.constant 0 : index
    %c0_15 = arith.constant 0 : index
    %35 = vector.load %arg6[%c0_13, %c0_14, %c0_15] : memref<1x16x1xf32, #tpu.memory_space<vmem>>, vector<1x16x1xf32>
    %36 = vector.shape_cast %35 : vector<1x16x1xf32> to vector<16x1xf32>
    %37 = vector.shape_cast %34 : vector<16x1xf32> to vector<1x16x1xf32>
    tpu.vector_store %arg6[%c0_13, %c0_14, %c0_15], %37 {strides = array<i32>} : memref<1x16x1xf32, #tpu.memory_space<vmem>>, vector<1x16x1xf32>,
    return
  }
  func.func @transform_0(%arg0: i32) -> (i32, i32) {
    %c0_i32 = arith.constant 0 : i32
    %c0_i32_0 = arith.constant 0 : i32
    return %arg0, %c0_i32 : i32, i32
  }
  func.func @transform_1(%arg0: i32) -> (i32, i32) {
    %c0_i32 = arith.constant 0 : i32
    %c0_i32_0 = arith.constant 0 : i32
    %c0_i32_1 = arith.constant 0 : i32
    return %c0_i32, %c0_i32_0 : i32, i32
  }
  func.func @transform_2(%arg0: i32) -> (i32, i32) {
    %c0_i32 = arith.constant 0 : i32
    %c0_i32_0 = arith.constant 0 : i32
    %c0_i32_1 = arith.constant 0 : i32
    return %c0_i32, %c0_i32_0 : i32, i32
  }
  func.func @transform_3(%arg0: i32) -> (i32, i32) {
    %c0_i32 = arith.constant 0 : i32
    %c0_i32_0 = arith.constant 0 : i32
    %c0_i32_1 = arith.constant 0 : i32
    return %c0_i32, %c0_i32_0 : i32, i32
  }
  func.func @transform_4(%arg0: i32) -> (i32, i32) {
    %c0_i32 = arith.constant 0 : i32
    %c0_i32_0 = arith.constant 0 : i32
    %c0_i32_1 = arith.constant 0 : i32
    return %c0_i32, %c0_i32_0 : i32, i32
  }
  func.func @transform_5(%arg0: i32) -> (i32, i32, i32) {
    %c0_i32 = arith.constant 0 : i32
    %c0_i32_0 = arith.constant 0 : i32
    %c0_i32_1 = arith.constant 0 : i32
    return %arg0, %c0_i32, %c0_i32_0 : i32, i32, i32
  }
}

</mosaic_0001>

<bundles_post_ra>
// kernel: tile.8
= control target key start
LH: loop header
LB: loop body
LE: loop exit
PB: predicated region body
PF: predicated region fallthrough
CT: control target
= control target key end

     0   :  { %s22_s0 = inlined_call_operand.vmem [shape: f32[8], index: 0, kind: input, shape index: {}]   ;;  %s23_s1 = inlined_call_operand.vmem [shape: f32[2,8], index: 1, kind: output, shape index: {}]  }
   0x1   :  { %v4_v0 = vld [vmem:[%s22_s0] ss:$0 sm:$0xff] }
   0x2   :  { %5 = vst [vmem:[%s23_s1] sm:$0x3] %v4_v0 }

// kernel: tile.0
= control target key start
LH: loop header
LB: loop body
LE: loop exit
PB: predicated region body
PF: predicated region fallthrough
CT: control target
= control target key end

     0   :  { %s66_s8 = smov 125   ;;  %s67_s9 = smov 123   ;;  %vm7_vm0 = vcmask 7168   ;;  %s117_s0 = inlined_call_operand.vmem [shape: f32[2,8], index: 0, kind: input, shape index: {}]   ;;  %s118_s1 = inlined_call_operand.vmem [shape: f32[16,1], index: 1, kind: output, shape index: {}]  }
   0x1   :  { %v4_v0 = vld [vmem:[%s117_s0] sm:$0x3]  ;;  %s65_s0 = smov 127   ;;  %s68_s10 = smov 126  }
   0x2   :  { %5 = vst [vmem:[#allocation0] sm:$0x3] %v4_v0  ;;  %s69_s11 = smov 124   ;;  %s70_s12 = smov 122  }
   0x3   :  { %s71_s13 = smov 121  }
   0x9   :  { %v9_v1 = vld [vmem:[#allocation0] sm:$0x3]  }
   0xa   :  { %v21_v2 = vld [vmem:[#allocation0] sm:$0x3]   ;;  %10 = vrot.lane.b32.xlu0 %v9_v1, %s65_s0 }
   0xb   :  { %22 = vrot.lane.b32.xlu1 %v21_v2, %s66_s8  ;;  %v33_v3 = vld [vmem:[#allocation0] sm:$0x3]  }
   0xc   :  { %34 = vrot.lane.b32.xlu2 %v33_v3, %s67_s9  ;;  %v15_v4 = vld [vmem:[#allocation0] sm:$0x3]  }
   0xd   :  { %v27_v5 = vld [vmem:[#allocation0] sm:$0x3]  }
   0xe   :  { %v39_v6 = vld [vmem:[#allocation0] sm:$0x3]  }
   0xf   :  { %v45_v7 = vld [vmem:[#allocation0] sm:$0x3]  }
  0x10   :  { %v6_v8 = vld [vmem:[#allocation0] sm:$0x3]  }
  0x11   :  { %8 = vst.msk [vmem:[%s118_s1] ss:$8 sm:$0x3] %vm7_vm0, %v6_v8  }
  0x12   :  { %16 = vrot.lane.b32.xlu0 %v15_v4, %s68_s10 }
  0x13   :  { %28 = vrot.lane.b32.xlu1 %v27_v5, %s69_s11 }
  0x14   :  { %40 = vrot.lane.b32.xlu2 %v39_v6, %s70_s12 }
  0x1a   :  { %46 = vrot.lane.b32.xlu0 %v45_v7, %s71_s13 }
  0x66   :  { %v35_v9 = vpop.permute.xlu2 %34  }
  0x67   :  { %55 = vst.msk [vmem:[%s118_s1 + $0x5] ss:$8 sm:$0x3] %vm7_vm0, %v35_v9  }
  0x6e   :  { %v41_v10 = vpop.permute.xlu2 %40  }
  0x6f   :  { %56 = vst.msk [vmem:[%s118_s1 + $0x6] ss:$8 sm:$0x3] %vm7_vm0, %v41_v10  }
  0x7c   :  { %v11_v11 = vpop.permute.xlu0 %10  }
  0x7d   :  { %v23_v12 = vpop.permute.xlu1 %22   ;;  %51 = vst.msk [vmem:[%s118_s1 + $0x1] ss:$8 sm:$0x3] %vm7_vm0, %v11_v11  }
  0x7e   :  { %53 = vst.msk [vmem:[%s118_s1 + $0x3] ss:$8 sm:$0x3] %vm7_vm0, %v23_v12  }
  0x84   :  { %v17_v13 = vpop.permute.xlu0 %16  }
  0x85   :  { %v29_v14 = vpop.permute.xlu1 %28   ;;  %52 = vst.msk [vmem:[%s118_s1 + $0x2] ss:$8 sm:$0x3] %vm7_vm0, %v17_v13  }
  0x86   :  { %54 = vst.msk [vmem:[%s118_s1 + $0x4] ss:$8 sm:$0x3] %vm7_vm0, %v29_v14  }
  0x8c   :  { %v47_v15 = vpop.permute.xlu0 %46  }
  0x8d   :  { %57 = vst.msk [vmem:[%s118_s1 + $0x7] ss:$8 sm:$0x3] %vm7_vm0, %v47_v15  }

// kernel: slot_generator.1
= control target key start
LH: loop header
LB: loop body
LE: loop exit
PB: predicated region body
PF: predicated region fallthrough
CT: control target
= control target key end

     0   :  { %10 = vsyncpa [#allocation3], 0  ;;  %s1013_s0 = inlined_call_operand.vmem [shape: f32[8,256], index: 0, kind: input, shape index: {}]   ;;  %s1014_s1 = inlined_call_operand.vmem [shape: f32[16,8], index: 1, kind: input, shape index: {}]   ;;  %s1015_s2 = inlined_call_operand.vmem [shape: f32[16,1], index: 2, kind: input, shape index: {}]   ;;  %s1016_s3 = inlined_call_operand.hbm [shape: f32[256,256], index: 3, kind: input, shape index: {}]   ;;  %s1017_s4 = inlined_call_operand.hbm [shape: f32[256,256], index: 4, kind: input, shape index: {}]   ;;  %s1018_s5 = inlined_call_operand.vmem [shape: f32[1,16,1], index: 5, kind: output, shape index: {}]  }
   0x1   :  { %s22_s20 = sshll.u32 %s1016_s3, 4  ;;  %s23_s20 = int_to_ptr.hbm [resolvable:$true] %s22_s20 }
   0x2   :  { %11 = vsyncpa [#allocation5], 0  ;;  %s822_s21 = smov [#allocation2]   ;;  %s35_s25 = sshll.u32 %s1017_s4, 4  ;;  %s36_s25 = int_to_ptr.hbm [resolvable:$true] %s35_s25 }
   0x3   :  { %s24_s22 = sshll.u32 %s822_s21, 4  ;;  %s823_s26 = smov 256   ;;  %s25_s22 = int_to_ptr.vmem [resolvable:$true] %s24_s22 }
   0x4   :  { %s824_s27 = smov 16   ;;  %s825_s28 = smov [#allocation4]  }
   0x5   :  { %30 = dma.hbm_to_vmem [thread:$0]  %s23_s20, 8192, %s25_s22, [#allocation3], %s823_s26, %s823_s26, %s824_s27  }
   0x6   :  { %s37_s29 = sshll.u32 %s825_s28, 4  ;;  %s38_s29 = int_to_ptr.vmem [resolvable:$true] %s37_s29 }
   0x7   :  { %43 = dma.hbm_to_vmem [thread:$0]  %s36_s25, 8192, %s38_s29, [#allocation5], %s823_s26, %s823_s26, %s824_s27  }
   0x8   :  { %818 = dma.done.wait [#allocation3], 8192  }
   0x9   :  { %819 = vsyncadd [#allocation3], 4294959104 }
   0xa   :  { %820 = dma.done.wait [#allocation5], 8192  }
   0xb   :  { %821 = vsyncadd [#allocation5], 4294959104  ;;  %v826_v0 = vmov 0   ;;  %vm68_vm0 = vcmask 64512   ;;  %v52_v1 = vld [vmem:[%s1013_s0] sm:$0xff]  ;;  %v53_v2 = vld [vmem:[%s1013_s0 + $0x8] sm:$0xff]  ;;  %v129_v19 = vlaneseq }
   0xc   :  { %701 = vset.pattern.permute.xlu0 %v826_v0  ;;  %v54_v3 = vld [vmem:[%s1014_s1] sm:$0xff]  ;;  %90 = vmatpush.msra.mxu0 %v52_v1  ;;  %v55_v5 = vld [vmem:[%s1014_s1 + $0x8] sm:$0xff]  ;;  %s827_s0 = smov 127   ;;  %s828_s1 = smov 126   ;;  %v221_v53 = vld [vmem:[#allocation2 + $0xf0] sm:$0xff] }
   0xd   :  { %113 = vmatpush.msra.mxu1 %v53_v2  ;;  %v56_v4 = vld [vmem:[%s1015_s2] sm:$0xff]  ;;  %685 = vmatmul.msk.f32.vlgmr.msra.gmra.mxu0 %vm68_vm0, %v54_v3  ;;  %v57_v6 = vld [vmem:[%s1015_s2 + $0x8] sm:$0xff]  ;;  %v900_v20 = vand.u32 127, %v129_v19  ;;  %s829_s2 = smov 124   ;;  %v253_v54 = vld [vmem:[#allocation2 + $0x1f0] sm:$0xff]  ;;  %s830_s15 = smov 120  }
   0xe   :  { %687 = vmatmul.msk.f32.vlgmr.msra.gmra.mxu1 %vm68_vm0, %v54_v3  ;;  %60 = vperm.xlu0 %701, %v56_v4   ;;  %v222_v55 = vld [vmem:[#allocation2 + $0xf8] sm:$0xff]  ;;  %v219_v57 = vld [vmem:[#allocation2 + $0xe0] sm:$0xff]  ;;  %v220_v59 = vld [vmem:[#allocation2 + $0xe8] sm:$0xff]  ;;  %s831_s16 = smov 112   ;;  %s832_s17 = smov 96  }
   0xf   :  { %vm131_vm1 = vcmp.lt.s32.totalorder %v900_v20, 127  ;;  %vm148_vm2 = vcmp.lt.s32.totalorder %v900_v20, 126  ;;  %255 = vmatpush.msra.mxu2 %v221_v53  ;;  %278 = vmatpush.msra.mxu3 %v253_v54  ;;  %v254_v56 = vld [vmem:[#allocation2 + $0x1f8] sm:$0xff]  ;;  %v251_v58 = vld [vmem:[#allocation2 + $0x1e0] sm:$0xff]  ;;  %v252_v60 = vld [vmem:[#allocation2 + $0x1e8] sm:$0xff]  ;;  %vm165_vm3 = vcmp.lt.s32.totalorder %v900_v20, 124 }
  0x10   :  { %301 = vmatpush.msrb.mxu0 %v222_v55  ;;  %324 = vmatpush.msrb.mxu1 %v254_v56  ;;  %v217_v61 = vld [vmem:[#allocation2 + $0xd0] sm:$0xff]  ;;  %v218_v63 = vld [vmem:[#allocation2 + $0xd8] sm:$0xff]  ;;  %v215_v1 = vld [vmem:[#allocation2 + $0xc0] sm:$0xff]  ;;  %vm182_vm4 = vcmp.lt.s32.totalorder %v900_v20, 120  ;;  %s833_s18 = smov 64  }
  0x11   :  { %256 = vmatpush.msra.mxu2 %v219_v57  ;;  %279 = vmatpush.msra.mxu3 %v251_v58  ;;  %v249_v62 = vld [vmem:[#allocation2 + $0x1d0] sm:$0xff]  ;;  %v250_v0 = vld [vmem:[#allocation2 + $0x1d8] sm:$0xff]  ;;  %v247_v2 = vld [vmem:[#allocation2 + $0x1c0] sm:$0xff] }
  0x12   :  { %302 = vmatpush.msrb.mxu0 %v220_v59  ;;  %325 = vmatpush.msrb.mxu1 %v252_v60  ;;  %v216_v3 = vld [vmem:[#allocation2 + $0xc8] sm:$0xff]  ;;  %v210_v19 = vld [vmem:[#allocation2 + $0x98] sm:$0xff]  ;;  %v197_v54 = vld [vmem:[#allocation2 + $0x30] sm:$0xff] }
  0x13   :  { %257 = vmatpush.msra.mxu2 %v217_v61  ;;  %280 = vmatpush.msra.mxu3 %v249_v62  ;;  %v248_v4 = vld [vmem:[#allocation2 + $0x1c8] sm:$0xff]  ;;  %v198_v55 = vld [vmem:[#allocation2 + $0x38] sm:$0xff] }
  0x14   :  { %303 = vmatpush.msrb.mxu0 %v218_v63  ;;  %326 = vmatpush.msrb.mxu1 %v250_v0  ;;  %v232_v53 = vld [vmem:[#allocation2 + $0x148] sm:$0xff]  ;;  %v230_v56 = vld [vmem:[#allocation2 + $0x138] sm:$0xff]  ;;  %v195_v0 = vld [vmem:[#allocation2 + $0x20] sm:$0xff] }
  0x15   :  { %686 = vmatmul.msk.f32.gmra.mxu0 %vm68_vm0, %v55_v5  ;;  %258 = vmatpush.msra.mxu2 %v215_v1  ;;  %v227_v1 = vld [vmem:[#allocation2 + $0x120] sm:$0xff] }
  0x16   :  { %688 = vmatmul.msk.f32.gmra.mxu1 %vm68_vm0, %v55_v5  ;;  %65 = vperm.xlu0 %701, %v57_v6   ;;  %v213_v5 = vld [vmem:[#allocation2 + $0xb0] sm:$0xff] }
  0x17   :  { %v245_v6 = vld [vmem:[#allocation2 + $0x1b0] sm:$0xff]  ;;  %281 = vmatpush.msra.mxu3 %v247_v2  ;;  %304 = vmatpush.msrb.mxu0 %v216_v3  ;;  %v196_v2 = vld [vmem:[#allocation2 + $0x28] sm:$0xff] }
  0x18   :  { %327 = vmatpush.msrb.mxu1 %v248_v4  ;;  %259 = vmatpush.msra.mxu2 %v213_v5  ;;  %v228_v3 = vld [vmem:[#allocation2 + $0x128] sm:$0xff]  ;;  %v193_v4 = vld [vmem:[#allocation2 + $0x10] sm:$0xff] }
  0x19   :  { %282 = vmatpush.msra.mxu3 %v245_v6  ;;  %v225_v5 = vld [vmem:[#allocation2 + $0x110] sm:$0xff]  ;;  %v194_v6 = vld [vmem:[#allocation2 + $0x18] sm:$0xff] }
  0x80   :  { %v61_v7 = vpop.permute.xlu0 %60 }
  0x88   :  { %v66_v13 = vpop.permute.xlu0 %65 }
  0x8a   :  { %v92_v8 = vpop.f32.mrf.mxu0 }
  0x8b   :  { %v115_v9 = vpop.f32.mrf.mxu1  ;;  %v888_v10 = vadd.f32 %v92_v8, %v61_v7  ;;  %v246_v8 = vld [vmem:[#allocation2 + $0x1b8] sm:$0xff] }
  0x8c   :  { %v890_v11 = vadd.f32 %v115_v9, %v61_v7  ;;  %v214_v7 = vld [vmem:[#allocation2 + $0xb8] sm:$0xff]  ;;  %v211_v9 = vld [vmem:[#allocation2 + $0xa0] sm:$0xff]  ;;  %328 = vmatpush.msrb.mxu1 %v246_v8  ;;  %v192_v8 = vld [vmem:[#allocation2 + $0x8] sm:$0xff] }
  0x8d   :  { %305 = vmatpush.msrb.mxu0 %v214_v7  ;;  %260 = vmatpush.msra.mxu2 %v211_v9  ;;  %v191_v7 = vld [vmem:[#allocation2] sm:$0xff]  ;;  %v224_v9 = vld [vmem:[#allocation2 + $0x108] sm:$0xff] }
  0x8e   :  { %v702_v12 = vpack.i.bf16 %v890_v11, %v888_v10 }
  0x90   :  { %703 = vrot.lane.b32.xlu1 %v702_v12, %s827_s0  ;;  %v243_v12 = vld [vmem:[#allocation2 + $0x1a0] sm:$0xff] }
  0x91   :  { %283 = vmatpush.msra.mxu3 %v243_v12 }
  0x92   :  { %v95_v14 = vpop.f32.mrf.mxu0 }
  0x93   :  { %v118_v15 = vpop.f32.mrf.mxu1  ;;  %v894_v16 = vadd.f32 %v95_v14, %v66_v13  ;;  %v244_v14 = vld [vmem:[#allocation2 + $0x1a8] sm:$0xff] }
  0x94   :  { %v896_v17 = vadd.f32 %v118_v15, %v66_v13  ;;  %v212_v13 = vld [vmem:[#allocation2 + $0xa8] sm:$0xff]  ;;  %v209_v15 = vld [vmem:[#allocation2 + $0x90] sm:$0xff]  ;;  %329 = vmatpush.msrb.mxu1 %v244_v14 }
  0x95   :  { %306 = vmatpush.msrb.mxu0 %v212_v13  ;;  %261 = vmatpush.msra.mxu2 %v209_v15 }
  0x96   :  { %v707_v18 = vpack.i.bf16 %v896_v17, %v894_v16 }
  0x97   :  { %307 = vmatpush.msrb.mxu0 %v210_v19 }
  0x98   :  { %708 = vrot.lane.b32.xlu1 %v707_v18, %s827_s0  ;;  %v241_v18 = vld [vmem:[#allocation2 + $0x190] sm:$0xff] }
  0x99   :  { %284 = vmatpush.msra.mxu3 %v241_v18 }
 0x102   :  { %v704_v21 = vpop.permute.xlu1 %703 }
 0x103   :  { %v706_v22 = vunpack.i.h.bf16 %v704_v21  ;;  %v705_v23 = vunpack.i.l.bf16 %v704_v21  ;;  %v242_v21 = vld [vmem:[#allocation2 + $0x198] sm:$0xff] }
 0x104   :  { %330 = vmatpush.msrb.mxu1 %v242_v21 }
 0x105   :  { %v132_v24 = vsel %vm131_vm1, %v705_v23, %v706_v22  ;;  %v134_v25 = vsel %vm131_vm1, %v706_v22, %v705_v23  ;;  %v207_v22 = vld [vmem:[#allocation2 + $0x80] sm:$0xff] }
 0x106   :  { %v136_v26 = vmax.f32 %v888_v10, %v132_v24  ;;  %v137_v27 = vmax.f32 %v890_v11, %v134_v25  ;;  %v239_v23 = vld [vmem:[#allocation2 + $0x180] sm:$0xff]  ;;  %v208_v24 = vld [vmem:[#allocation2 + $0x88] sm:$0xff]  ;;  %262 = vmatpush.msra.mxu2 %v207_v22  ;;  %v421_v22 = vld [vmem:[#allocation4 + $0x1f0] sm:$0xff] }
 0x107   :  { %v240_v25 = vld [vmem:[#allocation2 + $0x188] sm:$0xff]  ;;  %285 = vmatpush.msra.mxu3 %v239_v23  ;;  %308 = vmatpush.msrb.mxu0 %v208_v24  ;;  %v422_v23 = vld [vmem:[#allocation4 + $0x1f8] sm:$0xff]  ;;  %v419_v24 = vld [vmem:[#allocation4 + $0x1e0] sm:$0xff] }
 0x108   :  { %v712_v28 = vpack.i.bf16 %v137_v27, %v136_v26  ;;  %331 = vmatpush.msrb.mxu1 %v240_v25  ;;  %v420_v25 = vld [vmem:[#allocation4 + $0x1e8] sm:$0xff] }
 0x10a   :  { %v709_v29 = vpop.permute.xlu1 %708  ;;  %713 = vrot.lane.b32.xlu2 %v712_v28, %s828_s1  ;;  %v206_v28 = vld [vmem:[#allocation2 + $0x78] sm:$0xff] }
 0x10b   :  { %v711_v30 = vunpack.i.h.bf16 %v709_v29  ;;  %v710_v31 = vunpack.i.l.bf16 %v709_v29  ;;  %v238_v29 = vld [vmem:[#allocation2 + $0x178] sm:$0xff]  ;;  %309 = vmatpush.msrb.mxu0 %v206_v28  ;;  %v389_v28 = vld [vmem:[#allocation4 + $0xf0] sm:$0xff] }
 0x10c   :  { %332 = vmatpush.msrb.mxu1 %v238_v29  ;;  %v390_v29 = vld [vmem:[#allocation4 + $0xf8] sm:$0xff] }
 0x10d   :  { %v133_v32 = vsel %vm131_vm1, %v710_v31, %v711_v30  ;;  %v135_v33 = vsel %vm131_vm1, %v711_v30, %v710_v31  ;;  %v203_v31 = vld [vmem:[#allocation2 + $0x60] sm:$0xff] }
 0x10e   :  { %v138_v34 = vmax.f32 %v894_v16, %v133_v32  ;;  %v139_v35 = vmax.f32 %v896_v17, %v135_v33  ;;  %v235_v32 = vld [vmem:[#allocation2 + $0x160] sm:$0xff] }
 0x110   :  { %v717_v36 = vpack.i.bf16 %v139_v35, %v138_v34 }
 0x112   :  { %718 = vrot.lane.b32.xlu2 %v717_v36, %s828_s1  ;;  %v236_v36 = vld [vmem:[#allocation2 + $0x168] sm:$0xff] }
 0x113   :  { %333 = vmatpush.msrb.mxu1 %v236_v36  ;;  %v413_v36 = vld [vmem:[#allocation4 + $0x1b0] sm:$0xff] }
 0x164   :  { %v714_v37 = vpop.permute.xlu2 %713 }
 0x165   :  { %v716_v38 = vunpack.i.h.bf16 %v714_v37  ;;  %v715_v39 = vunpack.i.l.bf16 %v714_v37  ;;  %v201_v37 = vld [vmem:[#allocation2 + $0x50] sm:$0xff] }
 0x167   :  { %v149_v40 = vsel %vm148_vm2, %v715_v39, %v716_v38  ;;  %v151_v41 = vsel %vm148_vm2, %v716_v38, %v715_v39  ;;  %v233_v38 = vld [vmem:[#allocation2 + $0x150] sm:$0xff] }
 0x168   :  { %v908_v42 = vmax.f32 %v136_v26, %v149_v40  ;;  %v910_v43 = vmax.f32 %v137_v27, %v151_v41  ;;  %v205_v26 = vld [vmem:[#allocation2 + $0x70] sm:$0xff]  ;;  %v202_v41 = vld [vmem:[#allocation2 + $0x58] sm:$0xff] }
 0x169   :  { %v237_v27 = vld [vmem:[#allocation2 + $0x170] sm:$0xff]  ;;  %263 = vmatpush.msra.mxu2 %v205_v26 }
 0x16a   :  { %v722_v44 = vpack.i.bf16 %v910_v43, %v908_v42  ;;  %286 = vmatpush.msra.mxu3 %v237_v27  ;;  %v417_v26 = vld [vmem:[#allocation4 + $0x1d0] sm:$0xff]  ;;  %v418_v27 = vld [vmem:[#allocation4 + $0x1d8] sm:$0xff] }
 0x16b   :  { %264 = vmatpush.msra.mxu2 %v203_v31  ;;  %v415_v31 = vld [vmem:[#allocation4 + $0x1c0] sm:$0xff] }
 0x16c   :  { %v719_v45 = vpop.permute.xlu2 %718  ;;  %723 = vrot.lane.b32.xlu0 %v722_v44, %s829_s2  ;;  %287 = vmatpush.msra.mxu3 %v235_v32  ;;  %v234_v44 = vld [vmem:[#allocation2 + $0x158] sm:$0xff]  ;;  %v416_v32 = vld [vmem:[#allocation4 + $0x1c8] sm:$0xff] }
 0x16d   :  { %v721_v46 = vunpack.i.h.bf16 %v719_v45  ;;  %v720_v47 = vunpack.i.l.bf16 %v719_v45  ;;  %265 = vmatpush.msra.mxu2 %v201_v37  ;;  %334 = vmatpush.msrb.mxu1 %v234_v44  ;;  %v414_v37 = vld [vmem:[#allocation4 + $0x1b8] sm:$0xff]  ;;  %v381_v44 = vld [vmem:[#allocation4 + $0xb0] sm:$0xff] }
 0x16e   :  { %288 = vmatpush.msra.mxu3 %v233_v38  ;;  %v383_v38 = vld [vmem:[#allocation4 + $0xc0] sm:$0xff] }
 0x16f   :  { %v150_v48 = vsel %vm148_vm2, %v720_v47, %v721_v46  ;;  %v152_v49 = vsel %vm148_vm2, %v721_v46, %v720_v47  ;;  %v199_v47 = vld [vmem:[#allocation2 + $0x40] sm:$0xff]  ;;  %335 = vmatpush.msrb.mxu1 %v232_v53  ;;  %v408_v53 = vld [vmem:[#allocation4 + $0x188] sm:$0xff] }
 0x170   :  { %v914_v50 = vmax.f32 %v138_v34, %v150_v48  ;;  %v916_v51 = vmax.f32 %v139_v35, %v152_v49  ;;  %v204_v35 = vld [vmem:[#allocation2 + $0x68] sm:$0xff]  ;;  %v231_v48 = vld [vmem:[#allocation2 + $0x140] sm:$0xff]  ;;  %266 = vmatpush.msra.mxu2 %v199_v47  ;;  %v410_v47 = vld [vmem:[#allocation4 + $0x198] sm:$0xff] }
 0x171   :  { %310 = vmatpush.msrb.mxu0 %v204_v35  ;;  %v200_v49 = vld [vmem:[#allocation2 + $0x48] sm:$0xff]  ;;  %289 = vmatpush.msra.mxu3 %v231_v48  ;;  %v386_v35 = vld [vmem:[#allocation4 + $0xd8] sm:$0xff]  ;;  %v379_v48 = vld [vmem:[#allocation4 + $0xa0] sm:$0xff] }
 0x172   :  { %v727_v52 = vpack.i.bf16 %v916_v51, %v914_v50  ;;  %267 = vmatpush.msra.mxu2 %v197_v54  ;;  %336 = vmatpush.msrb.mxu1 %v230_v56  ;;  %v405_v54 = vld [vmem:[#allocation4 + $0x170] sm:$0xff] }
 0x173   :  { %311 = vmatpush.msrb.mxu0 %v202_v41  ;;  %v412_v41 = vld [vmem:[#allocation4 + $0x1a8] sm:$0xff] }
 0x174   :  { %728 = vrot.lane.b32.xlu1 %v727_v52, %s829_s2  ;;  %268 = vmatpush.msra.mxu2 %v195_v0  ;;  %v403_v0 = vld [vmem:[#allocation4 + $0x160] sm:$0xff] }
 0x175   :  { %312 = vmatpush.msrb.mxu0 %v200_v49  ;;  %337 = vmatpush.msrb.mxu1 %v228_v3  ;;  %v380_v49 = vld [vmem:[#allocation4 + $0xa8] sm:$0xff]  ;;  %v375_v3 = vld [vmem:[#allocation4 + $0x80] sm:$0xff] }
 0x176   :  { %269 = vmatpush.msra.mxu2 %v193_v4  ;;  %v401_v4 = vld [vmem:[#allocation4 + $0x150] sm:$0xff] }
 0x177   :  { %313 = vmatpush.msrb.mxu0 %v198_v55 }
 0x178   :  { %270 = vmatpush.msra.mxu2 %v191_v7  ;;  %v400_v7 = vld [vmem:[#allocation4 + $0x148] sm:$0xff] }
 0x179   :  { %314 = vmatpush.msrb.mxu0 %v196_v2  ;;  %v404_v2 = vld [vmem:[#allocation4 + $0x168] sm:$0xff] }
 0x17a   :  { %423 = vmatpush.msrb.mxu2 %v389_v28  ;;  %v363_v28 = vld [vmem:[#allocation4 + $0x20] sm:$0xff] }
 0x17b   :  { %315 = vmatpush.msrb.mxu0 %v194_v6  ;;  %v399_v6 = vld [vmem:[#allocation4 + $0x140] sm:$0xff] }
 0x17d   :  { %316 = vmatpush.msrb.mxu0 %v192_v8  ;;  %v397_v8 = vld [vmem:[#allocation4 + $0x130] sm:$0xff] }
 0x17f   :  { %469 = vmatpush.msra.mxu0 %v390_v29  ;;  %v364_v29 = vld [vmem:[#allocation4 + $0x28] sm:$0xff] }
 0x1de   :  { %v724_v30 = vpop.permute.xlu0 %723 }
 0x1df   :  { %v726_v33 = vunpack.i.h.bf16 %v724_v30  ;;  %v725_v34 = vunpack.i.l.bf16 %v724_v30  ;;  %v387_v30 = vld [vmem:[#allocation4 + $0xe0] sm:$0xff] }
 0x1e0   :  { %424 = vmatpush.msrb.mxu2 %v387_v30  ;;  %v361_v30 = vld [vmem:[#allocation4 + $0x10] sm:$0xff] }
 0x1e1   :  { %v166_v39 = vsel %vm165_vm3, %v725_v34, %v726_v33  ;;  %v168_v40 = vsel %vm165_vm3, %v726_v33, %v725_v34  ;;  %v388_v33 = vld [vmem:[#allocation4 + $0xe8] sm:$0xff]  ;;  %v385_v34 = vld [vmem:[#allocation4 + $0xd0] sm:$0xff] }
 0x1e2   :  { %v926_v45 = vmax.f32 %v908_v42, %v166_v39  ;;  %v929_v46 = vmax.f32 %v910_v43, %v168_v40  ;;  %v229_v42 = vld [vmem:[#allocation2 + $0x130] sm:$0xff]  ;;  %470 = vmatpush.msra.mxu0 %v388_v33  ;;  %v384_v39 = vld [vmem:[#allocation4 + $0xc8] sm:$0xff]  ;;  %425 = vmatpush.msrb.mxu2 %v385_v34  ;;  %v411_v40 = vld [vmem:[#allocation4 + $0x1a0] sm:$0xff] }
 0x1e3   :  { %290 = vmatpush.msra.mxu3 %v229_v42  ;;  %v406_v42 = vld [vmem:[#allocation4 + $0x178] sm:$0xff]  ;;  %v360_v33 = vld [vmem:[#allocation4 + $0x8] sm:$0xff] }
 0x1e4   :  { %v732_v52 = vpack.i.bf16 %v929_v46, %v926_v45  ;;  %471 = vmatpush.msra.mxu0 %v386_v35  ;;  %426 = vmatpush.msrb.mxu2 %v383_v38 }
 0x1e5   :  { %291 = vmatpush.msra.mxu3 %v227_v1  ;;  %v378_v1 = vld [vmem:[#allocation4 + $0x98] sm:$0xff] }
 0x1e6   :  { %v729_v43 = vpop.permute.xlu1 %728  ;;  %733 = vrot.lane.b32.xlu2 %v732_v52, %s830_s15  ;;  %472 = vmatpush.msra.mxu0 %v384_v39  ;;  %v407_v52 = vld [vmem:[#allocation4 + $0x180] sm:$0xff] }
 0x1e7   :  { %v731_v57 = vunpack.i.h.bf16 %v729_v43  ;;  %v730_v58 = vunpack.i.l.bf16 %v729_v43  ;;  %292 = vmatpush.msra.mxu3 %v225_v5  ;;  %427 = vmatpush.msrb.mxu2 %v381_v44  ;;  %v376_v5 = vld [vmem:[#allocation4 + $0x88] sm:$0xff] }
 0x1e9   :  { %v167_v59 = vsel %vm165_vm3, %v730_v58, %v731_v57  ;;  %v169_v60 = vsel %vm165_vm3, %v731_v57, %v730_v58  ;;  %428 = vmatpush.msrb.mxu2 %v379_v48 }
 0x1ea   :  { %v938_v61 = vmax.f32 %v914_v50, %v167_v59  ;;  %v941_v62 = vmax.f32 %v916_v51, %v169_v60  ;;  %v226_v50 = vld [vmem:[#allocation2 + $0x118] sm:$0xff]  ;;  %v223_v51 = vld [vmem:[#allocation2 + $0x100] sm:$0xff] }
 0x1eb   :  { %338 = vmatpush.msrb.mxu1 %v226_v50  ;;  %293 = vmatpush.msra.mxu3 %v223_v51  ;;  %v374_v50 = vld [vmem:[#allocation4 + $0x78] sm:$0xff]  ;;  %v371_v51 = vld [vmem:[#allocation4 + $0x60] sm:$0xff] }
 0x1ec   :  { %v737_v63 = vpack.i.bf16 %v941_v62, %v938_v61 }
 0x1ed   :  { %339 = vmatpush.msrb.mxu1 %v224_v9  ;;  %446 = vmatpush.msrb.mxu3 %v421_v22  ;;  %v372_v9 = vld [vmem:[#allocation4 + $0x68] sm:$0xff] }
 0x1ee   :  { %738 = vrot.lane.b32.xlu0 %v737_v63, %s830_s15  ;;  %v377_v63 = vld [vmem:[#allocation4 + $0x90] sm:$0xff]  ;;  %v368_v22 = vld [vmem:[#allocation4 + $0x48] sm:$0xff] }
 0x1ef   :  { %492 = vmatpush.msra.mxu1 %v422_v23  ;;  %447 = vmatpush.msrb.mxu3 %v419_v24  ;;  %v394_v23 = vld [vmem:[#allocation4 + $0x118] sm:$0xff]  ;;  %v365_v24 = vld [vmem:[#allocation4 + $0x30] sm:$0xff] }
 0x1f0   :  { %429 = vmatpush.msrb.mxu2 %v377_v63 }
 0x1f1   :  { %493 = vmatpush.msra.mxu1 %v420_v25  ;;  %448 = vmatpush.msrb.mxu3 %v417_v26  ;;  %v391_v25 = vld [vmem:[#allocation4 + $0x100] sm:$0xff]  ;;  %v366_v26 = vld [vmem:[#allocation4 + $0x38] sm:$0xff] }
 0x1f2   :  { %430 = vmatpush.msrb.mxu2 %v375_v3 }
 0x1f3   :  { %494 = vmatpush.msra.mxu1 %v418_v27  ;;  %449 = vmatpush.msrb.mxu3 %v415_v31  ;;  %v392_v27 = vld [vmem:[#allocation4 + $0x108] sm:$0xff]  ;;  %v362_v31 = vld [vmem:[#allocation4 + $0x18] sm:$0xff] }
 0x1f5   :  { %495 = vmatpush.msra.mxu1 %v416_v32  ;;  %450 = vmatpush.msrb.mxu3 %v413_v36  ;;  %v359_v32 = vld [vmem:[#allocation4] sm:$0xff] }
 0x1f7   :  { %496 = vmatpush.msra.mxu1 %v414_v37  ;;  %451 = vmatpush.msrb.mxu3 %v411_v40 }
 0x1f9   :  { %497 = vmatpush.msra.mxu1 %v412_v41 }
 0x1fb   :  { %498 = vmatpush.msra.mxu1 %v410_v47 }
 0x1fd   :  { %499 = vmatpush.msra.mxu1 %v408_v53 }
 0x1ff   :  { %500 = vmatpush.msra.mxu1 %v406_v42 }
 0x201   :  { %501 = vmatpush.msra.mxu1 %v404_v2 }
 0x240   :  { %v734_v12 = vpop.permute.xlu2 %733 }
 0x241   :  { %v736_v13 = vunpack.i.h.bf16 %v734_v12  ;;  %v735_v14 = vunpack.i.l.bf16 %v734_v12  ;;  %v398_v12 = vld [vmem:[#allocation4 + $0x138] sm:$0xff] }
 0x243   :  { %v183_v15 = vsel %vm182_vm4, %v735_v14, %v736_v13  ;;  %v185_v18 = vsel %vm182_vm4, %v736_v13, %v735_v14  ;;  %v369_v13 = vld [vmem:[#allocation4 + $0x50] sm:$0xff]  ;;  %v395_v14 = vld [vmem:[#allocation4 + $0x120] sm:$0xff] }
 0x244   :  { %v187_v19 = vmax.f32 %v926_v45, %v183_v15  ;;  %v188_v21 = vmax.f32 %v929_v46, %v185_v18  ;;  %v382_v45 = vld [vmem:[#allocation4 + $0xb8] sm:$0xff]  ;;  %v409_v46 = vld [vmem:[#allocation4 + $0x190] sm:$0xff]  ;;  %v396_v18 = vld [vmem:[#allocation4 + $0x128] sm:$0xff] }
 0x245   :  { %473 = vmatpush.msra.mxu0 %v382_v45  ;;  %452 = vmatpush.msrb.mxu3 %v409_v46  ;;  %v370_v15 = vld [vmem:[#allocation4 + $0x58] sm:$0xff] }
 0x246   :  { %271 = vmatmul.f32.vlgmr.msra.gmra.mxu2 %v187_v19  ;;  %294 = vmatmul.f32.vlgmr.msra.gmra.mxu3 %v188_v21 }
 0x247   :  { %317 = vmatmul.f32.vlgmr.msrb.gmra.mxu0 %v187_v19  ;;  %340 = vmatmul.f32.vlgmr.msrb.gmra.mxu1 %v188_v21  ;;  %v367_v19 = vld [vmem:[#allocation4 + $0x40] sm:$0xff]  ;;  %v393_v21 = vld [vmem:[#allocation4 + $0x110] sm:$0xff] }
 0x248   :  { %474 = vmatpush.msra.mxu0 %v380_v49  ;;  %453 = vmatpush.msrb.mxu3 %v407_v52 }
 0x24a   :  { %454 = vmatpush.msrb.mxu3 %v405_v54  ;;  %475 = vmatpush.msra.mxu0 %v378_v1 }
 0x24c   :  { %455 = vmatpush.msrb.mxu3 %v403_v0  ;;  %476 = vmatpush.msra.mxu0 %v376_v5 }
 0x24e   :  { %456 = vmatpush.msrb.mxu3 %v401_v4  ;;  %477 = vmatpush.msra.mxu0 %v374_v50 }
 0x250   :  { %457 = vmatpush.msrb.mxu3 %v399_v6  ;;  %478 = vmatpush.msra.mxu0 %v372_v9 }
 0x252   :  { %458 = vmatpush.msrb.mxu3 %v397_v8  ;;  %479 = vmatpush.msra.mxu0 %v370_v15 }
 0x254   :  { %459 = vmatpush.msrb.mxu3 %v395_v14  ;;  %480 = vmatpush.msra.mxu0 %v368_v22 }
 0x256   :  { %460 = vmatpush.msrb.mxu3 %v393_v21  ;;  %481 = vmatpush.msra.mxu0 %v366_v26 }
 0x258   :  { %461 = vmatpush.msrb.mxu3 %v391_v25  ;;  %482 = vmatpush.msra.mxu0 %v364_v29 }
 0x25a   :  { %483 = vmatpush.msra.mxu0 %v362_v31 }
 0x25c   :  { %484 = vmatpush.msra.mxu0 %v360_v33 }
 0x260   :  { %v739_v55 = vpop.permute.xlu0 %738 }
 0x261   :  { %v741_v43 = vunpack.i.h.bf16 %v739_v55  ;;  %v740_v56 = vunpack.i.l.bf16 %v739_v55 }
 0x263   :  { %v184_v57 = vsel %vm182_vm4, %v740_v56, %v741_v43  ;;  %v186_v58 = vsel %vm182_vm4, %v741_v43, %v740_v56 }
 0x264   :  { %v189_v59 = vmax.f32 %v938_v61, %v184_v57  ;;  %v190_v60 = vmax.f32 %v941_v62, %v186_v58  ;;  %v402_v61 = vld [vmem:[#allocation4 + $0x158] sm:$0xff]  ;;  %v373_v62 = vld [vmem:[#allocation4 + $0x70] sm:$0xff] }
 0x265   :  { %502 = vmatpush.msra.mxu1 %v402_v61  ;;  %431 = vmatpush.msrb.mxu2 %v373_v62 }
 0x266   :  { %274 = vmatmul.f32.gmra.mxu2 %v189_v59  ;;  %297 = vmatmul.f32.gmra.mxu3 %v190_v60 }
 0x267   :  { %320 = vmatmul.f32.gmra.mxu0 %v189_v59  ;;  %343 = vmatmul.f32.gmra.mxu1 %v190_v60 }
 0x268   :  { %503 = vmatpush.msra.mxu1 %v400_v7  ;;  %432 = vmatpush.msrb.mxu2 %v371_v51 }
 0x26a   :  { %504 = vmatpush.msra.mxu1 %v398_v12  ;;  %433 = vmatpush.msrb.mxu2 %v369_v13 }
 0x26c   :  { %505 = vmatpush.msra.mxu1 %v396_v18  ;;  %434 = vmatpush.msrb.mxu2 %v367_v19 }
 0x26e   :  { %506 = vmatpush.msra.mxu1 %v394_v23  ;;  %435 = vmatpush.msrb.mxu2 %v365_v24 }
 0x270   :  { %507 = vmatpush.msra.mxu1 %v392_v27  ;;  %436 = vmatpush.msrb.mxu2 %v363_v28 }
 0x272   :  { %437 = vmatpush.msrb.mxu2 %v361_v30 }
 0x274   :  { %438 = vmatpush.msrb.mxu2 %v359_v32 }
 0x2c4   :  { %v318_v34 = vpop.f32.mrf.mxu0  ;;  %v341_v35 = vpop.f32.mrf.mxu1 }
 0x2c5   :  { %v342_v36 = vadd.f32 %v341_v35, %v318_v34 }
 0x2c7   :  { %v348_v37 = vsub.f32 %v890_v11, %v342_v36 }
 0x2c9   :  { %v353_v38 = vmul.f32 1.442695, %v348_v37  ;;  %v272_v39 = vpop.f32.mrf.mxu2  ;;  %v295_v40 = vpop.f32.mrf.mxu3 }
 0x2ca   :  { %v296_v41 = vadd.f32 %v295_v40, %v272_v39 }
 0x2cb   :  { %742 = vpow2.f32 %v353_v38 }
 0x2cc   :  { %v347_v44 = vsub.f32 %v888_v10, %v296_v41 }
 0x2ce   :  { %v351_v45 = vmul.f32 1.442695, %v347_v44 }
 0x2d0   :  { %744 = vpow2.f32 %v351_v45 }
 0x2d1   :  { %v743_v46 = vpop.eup %742 }
 0x2d2   :  { %462 = vmatmul.f32.vlgmr.msrb.gmra.mxu3 %v743_v46  ;;  %508 = vmatmul.f32.vlgmr.msra.gmra.mxu1 %v743_v46 }
 0x2d6   :  { %v745_v47 = vpop.eup %744 }
 0x2d7   :  { %439 = vmatmul.f32.vlgmr.msrb.gmra.mxu2 %v745_v47  ;;  %485 = vmatmul.f32.vlgmr.msra.gmra.mxu0 %v745_v47 }
 0x2e4   :  { %v321_v48 = vpop.f32.mrf.mxu0  ;;  %v344_v49 = vpop.f32.mrf.mxu1 }
 0x2e5   :  { %v345_v52 = vadd.f32 %v344_v49, %v321_v48 }
 0x2e7   :  { %v350_v11 = vsub.f32 %v896_v17, %v345_v52 }
 0x2e9   :  { %v357_v53 = vmul.f32 1.442695, %v350_v11  ;;  %v275_v54 = vpop.f32.mrf.mxu2  ;;  %v298_v42 = vpop.f32.mrf.mxu3 }
 0x2ea   :  { %v299_v55 = vadd.f32 %v298_v42, %v275_v54 }
 0x2eb   :  { %746 = vpow2.f32 %v357_v53 }
 0x2ec   :  { %v349_v10 = vsub.f32 %v894_v16, %v299_v55 }
 0x2ee   :  { %v355_v43 = vmul.f32 1.442695, %v349_v10 }
 0x2f0   :  { %748 = vpow2.f32 %v355_v43 }
 0x2f1   :  { %v962_v56 = vpop.eup %746 }
 0x2f2   :  { %465 = vmatmul.f32.gmra.mxu3 %v962_v56  ;;  %511 = vmatmul.f32.gmra.mxu1 %v962_v56 }
 0x2f6   :  { %v966_v57 = vpop.eup %748 }
 0x2f7   :  { %442 = vmatmul.f32.gmra.mxu2 %v966_v57  ;;  %488 = vmatmul.f32.gmra.mxu0 %v966_v57 }
 0x34f   :  { %v509_v17 = vpop.f32.mrf.mxu1 }
 0x354   :  { %v486_v58 = vpop.f32.mrf.mxu0 }
 0x355   :  { %v510_v59 = vadd.f32 %v509_v17, %v486_v58  ;;  %v463_v60 = vpop.f32.mrf.mxu3 }
 0x357   :  { %750 = vrcp.f32 %v510_v59  ;;  %v541_v3 = vand.u32 2147483648, %v510_v59  ;;  %v539_v5 = vand.u32 2147483647, %v510_v59  ;;  %vm535_vm6 = vweird.f32 %v510_v59 }
 0x359   :  { %v542_v50 = vor.u32 1.1754944e-38, %v541_v3  ;;  %vm540_vm8 = vcmp.eq.f32.partialorder %v539_v5, 8.507059e+37 }
 0x35a   :  { %v440_v16 = vpop.f32.mrf.mxu2 }
 0x35b   :  { %v464_v63 = vadd.f32 %v463_v60, %v440_v16 }
 0x35d   :  { %v751_v0 = vpop.eup %750  ;;  %752 = vrcp.f32 %v464_v63  ;;  %v526_v9 = vand.u32 2147483648, %v464_v63  ;;  %v524_v13 = vand.u32 2147483647, %v464_v63  ;;  %vm520_vm10 = vweird.f32 %v464_v63 }
 0x35e   :  { %v531_v1 = vmul.f32 %v751_v0, %v510_v59  ;;  %vm536_vm5 = vweird.f32 %v751_v0 }
 0x35f   :  { %vm537_vm7 = vmor %vm535_vm6, %vm536_vm5  ;;  %v527_v19 = vor.u32 1.1754944e-38, %v526_v9  ;;  %vm525_vm12 = vcmp.eq.f32.partialorder %v524_v13, 8.507059e+37  ;;  %vm591_vm5 = vcmp.lt.s32.totalorder %v900_v20, 112  ;;  %vm608_vm6 = vcmp.lt.s32.totalorder %v900_v20, 96 }
 0x360   :  { %v532_v2 = vsub.f32 1.0, %v531_v1 }
 0x362   :  { %v533_v4 = vmul.f32 %v751_v0, %v532_v2 }
 0x363   :  { %v753_v61 = vpop.eup %752 }
 0x364   :  { %v534_v62 = vadd.f32 %v751_v0, %v533_v4  ;;  %v516_v6 = vmul.f32 %v753_v61, %v464_v63  ;;  %vm521_vm9 = vweird.f32 %v753_v61 }
 0x365   :  { %vm522_vm11 = vmor %vm520_vm10, %vm521_vm9 }
 0x366   :  { %v538_v7 = vsel %vm537_vm7, %v751_v0, %v534_v62  ;;  %v517_v51 = vsub.f32 1.0, %v516_v6  ;;  %vm625_vm7 = vcmp.lt.s32.totalorder %v900_v20, 64 }
 0x367   :  { %v543_v8 = vsel %vm540_vm8, %v542_v50, %v538_v7 }
 0x368   :  { %v518_v12 = vmul.f32 %v753_v61, %v517_v51  ;;  %v544_v14 = vmul.f32 %v743_v46, %v543_v8 }
 0x36a   :  { %v519_v15 = vadd.f32 %v753_v61, %v518_v12  ;;  %v577_v18 = vmul.f32 1.442695, %v544_v14 }
 0x36c   :  { %v523_v21 = vsel %vm522_vm11, %v753_v61, %v519_v15  ;;  %754 = vpow2.f32 %v577_v18 }
 0x36d   :  { %v528_v22 = vsel %vm525_vm12, %v527_v19, %v523_v21 }
 0x36e   :  { %v529_v23 = vmul.f32 %v745_v47, %v528_v22 }
 0x36f   :  { %v512_v26 = vpop.f32.mrf.mxu1 }
 0x370   :  { %v575_v24 = vmul.f32 1.442695, %v529_v23 }
 0x372   :  { %v970_v25 = vpop.eup %754  ;;  %756 = vpow2.f32 %v575_v24 }
 0x373   :  { %587 = vrot.lane.b32.xlu0 %v970_v25, %s831_s16 }
 0x374   :  { %v489_v27 = vpop.f32.mrf.mxu0 }
 0x375   :  { %v513_v28 = vadd.f32 %v512_v26, %v489_v27  ;;  %v466_v30 = vpop.f32.mrf.mxu3 }
 0x377   :  { %758 = vrcp.f32 %v513_v28  ;;  %v571_v36 = vand.u32 2147483648, %v513_v28  ;;  %v569_v38 = vand.u32 2147483647, %v513_v28  ;;  %vm565_vm14 = vweird.f32 %v513_v28 }
 0x378   :  { %v974_v29 = vpop.eup %756 }
 0x379   :  { %583 = vrot.lane.b32.xlu1 %v974_v29, %s831_s16  ;;  %v572_v44 = vor.u32 1.1754944e-38, %v571_v36  ;;  %vm570_vm0 = vcmp.eq.f32.partialorder %v569_v38, 8.507059e+37 }
 0x37a   :  { %v443_v31 = vpop.f32.mrf.mxu2 }
 0x37b   :  { %v467_v32 = vadd.f32 %v466_v30, %v443_v31 }
 0x37d   :  { %v759_v33 = vpop.eup %758  ;;  %760 = vrcp.f32 %v467_v32  ;;  %v556_v48 = vand.u32 2147483648, %v467_v32  ;;  %v554_v52 = vand.u32 2147483647, %v467_v32  ;;  %vm550_vm2 = vweird.f32 %v467_v32 }
 0x37e   :  { %v561_v34 = vmul.f32 %v759_v33, %v513_v28  ;;  %vm566_vm13 = vweird.f32 %v759_v33 }
 0x37f   :  { %vm567_vm15 = vmor %vm565_vm14, %vm566_vm13  ;;  %v557_v42 = vor.u32 1.1754944e-38, %v556_v48  ;;  %vm555_vm4 = vcmp.eq.f32.partialorder %v554_v52, 8.507059e+37 }
 0x380   :  { %v562_v35 = vsub.f32 1.0, %v561_v34 }
 0x382   :  { %v563_v37 = vmul.f32 %v759_v33, %v562_v35 }
 0x383   :  { %v761_v39 = vpop.eup %760 }
 0x384   :  { %v564_v40 = vadd.f32 %v759_v33, %v563_v37  ;;  %v546_v41 = vmul.f32 %v761_v39, %v467_v32  ;;  %vm551_vm1 = vweird.f32 %v761_v39 }
 0x385   :  { %vm552_vm3 = vmor %vm550_vm2, %vm551_vm1 }
 0x386   :  { %v568_v45 = vsel %vm567_vm15, %v759_v33, %v564_v40  ;;  %v547_v46 = vsub.f32 1.0, %v546_v41 }
 0x387   :  { %v573_v47 = vsel %vm570_vm0, %v572_v44, %v568_v45  ;;  %vm676_vm0 = vcmask 7168  }
 0x388   :  { %v548_v49 = vmul.f32 %v761_v39, %v547_v46  ;;  %v574_v11 = vmul.f32 %v962_v56, %v573_v47 }
 0x38a   :  { %v549_v53 = vadd.f32 %v761_v39, %v548_v49  ;;  %v581_v54 = vmul.f32 1.442695, %v574_v11 }
 0x38c   :  { %v553_v55 = vsel %vm552_vm3, %v761_v39, %v549_v53  ;;  %762 = vpow2.f32 %v581_v54 }
 0x38d   :  { %v558_v10 = vsel %vm555_vm4, %v557_v42, %v553_v55 }
 0x38e   :  { %v559_v43 = vmul.f32 %v966_v57, %v558_v10 }
 0x390   :  { %v579_v17 = vmul.f32 1.442695, %v559_v43 }
 0x392   :  { %v980_v58 = vpop.eup %762  ;;  %764 = vpow2.f32 %v579_v17 }
 0x393   :  { %589 = vrot.lane.b32.xlu1 %v980_v58, %s831_s16 }
 0x398   :  { %v984_v59 = vpop.eup %764 }
 0x399   :  { %585 = vrot.lane.b32.xlu2 %v984_v59, %s831_s16 }
 0x3e5   :  { %v588_v56 = vpop.permute.xlu0 %587 }
 0x3eb   :  { %v584_v60 = vpop.permute.xlu1 %583 }
 0x3ec   :  { %v592_v16 = vsel %vm591_vm5, %v584_v60, %v588_v56  ;;  %v594_v63 = vsel %vm591_vm5, %v588_v56, %v584_v60 }
 0x3ed   :  { %v596_v57 = vadd.f32 %v974_v29, %v592_v16  ;;  %v597_v0 = vadd.f32 %v970_v25, %v594_v63 }
 0x3ef   :  { %604 = vrot.lane.b32.xlu1 %v597_v0, %s832_s17  ;;  %600 = vrot.lane.b32.xlu2 %v596_v57, %s832_s17 }
 0x3f3   :  { %v586_v1 = vpop.permute.xlu2 %585 }
 0x405   :  { %v590_v2 = vpop.permute.xlu1 %589 }
 0x406   :  { %v593_v3 = vsel %vm591_vm5, %v586_v1, %v590_v2  ;;  %v595_v4 = vsel %vm591_vm5, %v590_v2, %v586_v1 }
 0x407   :  { %v598_v5 = vadd.f32 %v984_v59, %v593_v3  ;;  %v599_v61 = vadd.f32 %v980_v58, %v595_v4 }
 0x409   :  { %606 = vrot.lane.b32.xlu2 %v599_v61, %s832_s17  ;;  %602 = vrot.lane.b32.xlu0 %v598_v5, %s832_s17 }
 0x449   :  { %v601_v62 = vpop.permute.xlu2 %600 }
 0x461   :  { %v605_v6 = vpop.permute.xlu1 %604 }
 0x462   :  { %v609_v50 = vsel %vm608_vm6, %v601_v62, %v605_v6  ;;  %v611_v7 = vsel %vm608_vm6, %v605_v6, %v601_v62 }
 0x463   :  { %v613_v51 = vadd.f32 %v609_v50, %v596_v57  ;;  %v614_v8 = vadd.f32 %v611_v7, %v597_v0  ;;  %v607_v9 = vpop.permute.xlu2 %606 }
 0x465   :  { %621 = vrot.lane.b32.xlu2 %v614_v8, %s833_s18  ;;  %617 = vrot.lane.b32.xlu0 %v613_v51, %s833_s18 }
 0x47b   :  { %v603_v12 = vpop.permute.xlu0 %602 }
 0x47c   :  { %v610_v13 = vsel %vm608_vm6, %v603_v12, %v607_v9  ;;  %v612_v14 = vsel %vm608_vm6, %v607_v9, %v603_v12 }
 0x47d   :  { %v615_v15 = vadd.f32 %v610_v13, %v598_v5  ;;  %v616_v18 = vadd.f32 %v612_v14, %v599_v61 }
 0x47f   :  { %623 = vrot.lane.b32.xlu0 %v616_v18, %s833_s18  ;;  %619 = vrot.lane.b32.xlu1 %v615_v15, %s833_s18 }
 0x4bf   :  { %v622_v19 = vpop.permute.xlu2 %621 }
 0x4d7   :  { %v618_v21 = vpop.permute.xlu0 %617 }
 0x4d8   :  { %v626_v22 = vsel %vm625_vm7, %v618_v21, %v622_v19  ;;  %v628_v23 = vsel %vm625_vm7, %v622_v19, %v618_v21 }
 0x4d9   :  { %v630_v24 = vadd.f32 %v626_v22, %v613_v51  ;;  %v631_v26 = vadd.f32 %v628_v23, %v614_v8 }
 0x4db   :  { %v634_v27 = vadd.f32 %v631_v26, %v630_v24 }
 0x4dd   :  { %766 = vrcp.f32 %v634_v27  ;;  %v647_v32 = vand.u32 2147483648, %v634_v27  ;;  %v645_v34 = vand.u32 2147483647, %v634_v27  ;;  %vm641_vm9 = vweird.f32 %v634_v27 }
 0x4df   :  { %v648_v36 = vor.u32 1.1754944e-38, %v647_v32  ;;  %vm646_vm11 = vcmp.eq.f32.partialorder %v645_v34, 8.507059e+37 }
 0x4e3   :  { %v767_v28 = vpop.eup %766 }
 0x4e4   :  { %v637_v30 = vmul.f32 %v767_v28, %v634_v27  ;;  %vm642_vm8 = vweird.f32 %v767_v28 }
 0x4e5   :  { %vm643_vm10 = vmor %vm641_vm9, %vm642_vm8 }
 0x4e6   :  { %v638_v31 = vsub.f32 1.0, %v637_v30 }
 0x4e8   :  { %v639_v33 = vmul.f32 %v767_v28, %v638_v31 }
 0x4ea   :  { %v640_v35 = vadd.f32 %v767_v28, %v639_v33 }
 0x4ec   :  { %v644_v37 = vsel %vm643_vm10, %v767_v28, %v640_v35 }
 0x4ed   :  { %v649_v38 = vsel %vm646_vm11, %v648_v36, %v644_v37 }
 0x4ee   :  { %v650_v39 = vmul.f32 %v974_v29, %v649_v38  ;;  %v651_v40 = vmul.f32 %v970_v25, %v649_v38 }
 0x4f0   :  { %v668_v41 = vadd.f32 %v651_v40, %v650_v39 }
 0x4f1   :  { %v624_v44 = vpop.permute.xlu0 %623  ;;  %v620_v45 = vpop.permute.xlu1 %619 }
 0x4f2   :  { %v627_v46 = vsel %vm625_vm7, %v620_v45, %v624_v44  ;;  %v629_v47 = vsel %vm625_vm7, %v624_v44, %v620_v45  ;;  %669 = vadd.xlane.f32.xlu1 %v668_v41 }
 0x4f3   :  { %v632_v48 = vadd.f32 %v627_v46, %v615_v15  ;;  %v633_v49 = vadd.f32 %v629_v47, %v616_v18 }
 0x4f5   :  { %v635_v52 = vadd.f32 %v633_v49, %v632_v48 }
 0x4f7   :  { %768 = vrcp.f32 %v635_v52  ;;  %v663_v29 = vand.u32 2147483648, %v635_v52  ;;  %v661_v25 = vand.u32 2147483647, %v635_v52  ;;  %vm657_vm13 = vweird.f32 %v635_v52 }
 0x4f9   :  { %v664_v10 = vor.u32 1.1754944e-38, %v663_v29  ;;  %vm662_vm15 = vcmp.eq.f32.partialorder %v661_v25, 8.507059e+37 }
 0x4fd   :  { %v769_v11 = vpop.eup %768 }
 0x4fe   :  { %v653_v53 = vmul.f32 %v769_v11, %v635_v52  ;;  %vm658_vm12 = vweird.f32 %v769_v11 }
 0x4ff   :  { %vm659_vm14 = vmor %vm657_vm13, %vm658_vm12 }
 0x500   :  { %v654_v54 = vsub.f32 1.0, %v653_v53 }
 0x502   :  { %v655_v42 = vmul.f32 %v769_v11, %v654_v54 }
 0x504   :  { %v656_v55 = vadd.f32 %v769_v11, %v655_v42 }
 0x506   :  { %v660_v43 = vsel %vm659_vm14, %v769_v11, %v656_v55 }
 0x507   :  { %v665_v20 = vsel %vm662_vm15, %v664_v10, %v660_v43 }
 0x508   :  { %v666_v17 = vmul.f32 %v984_v59, %v665_v20  ;;  %v667_v56 = vmul.f32 %v980_v58, %v665_v20 }
 0x50a   :  { %v671_v60 = vadd.f32 %v667_v56, %v666_v17 }
 0x50c   :  { %672 = vadd.xlane.f32.xlu2 %v671_v60 }
 0x565   :  { %v670_v16 = vpop.xlane.xlu1 %669 }
 0x566   :  { %v674_v63 = vmul.f32 0.00390625, %v670_v16 }
 0x568   :  { %677 = vst.msk [vmem:[%s1018_s5] sm:$0xff] %vm676_vm0, %v674_v63 }
 0x57f   :  { %v673_v57 = vpop.xlane.xlu2 %672 }
 0x580   :  { %v675_v0 = vmul.f32 0.00390625, %v673_v57 }
 0x582   :  { %678 = vst.msk [vmem:[%s1018_s5 + $0x8] sm:$0xff] %vm676_vm0, %v675_v0 }
 0x583   :  { %683 = vsyncpa [#allocation3], 1 }
 0x584   :  { %684 = vsyncpa [#allocation5], 1 }

</bundles_post_ra>
